<compile_context>
chip_gen: v7x
topology: tpu7x:2x2x1
jax: 0.10.0
libtpu: 0.0.40
codegen_flags: <defaults>
</compile_context>

<pallas_src>
import functools

import jax
import jax.numpy as jnp
from jax.experimental import pallas as pl
from jax.experimental.pallas import tpu as pltpu

CLASS_NUMBERS = 10   # `class_numbers` global in the original script
IN_FEATURES = 256
HIDDEN = 64
LANE = 128           # class dim padded to full lane width
TILE_B = 128         # batch tile (multiple of 128)


def net_kernel(x_ref, w1_ref, b1_ref, w2_ref, b2_ref, o_ref,
               m_ref, s_ref, *, batch, tile_b):
    """Two-pass kernel over grid (pass, batch_tile).

    pass 0: accumulate per-class running max / sum-exp over the full batch
            (the log_softmax is over dim=0) into VMEM scratch.
    pass 1: recompute logits for the tile and write logits - LSE.
    """
    p = pl.program_id(0)
    i = pl.program_id(1)

    @pl.when(jnp.logical_and(p == 0, i == 0))
    def _init():
        m_ref[...] = jnp.full(m_ref.shape, -jnp.inf, dtype=jnp.float32)
        s_ref[...] = jnp.zeros(s_ref.shape, dtype=jnp.float32)

    # ---- forward math for this batch tile (recomputed in both passes; cheap) ----
    # bf16 operands for the MXU; f32 accumulation and all non-matmul math in f32.
    xb = x_ref[...].astype(jnp.bfloat16)                              # (tile_b, 256)
    h = jnp.tanh(
        jnp.dot(xb, w1_ref[...], preferred_element_type=jnp.float32) + b1_ref[...]
    )                                                                 # (tile_b, 64) f32
    # F.dropout(x, training=False) -> identity (eval mode).
    logits = (
        jnp.dot(h.astype(jnp.bfloat16), w2_ref[...],
                preferred_element_type=jnp.float32) + b2_ref[...]
    )                                                                 # (tile_b, 128) f32

    # Rows past the true batch (padding to a tile multiple) must not contribute
    # to the batch-axis softmax statistics.
    rows = i * tile_b + jax.lax.broadcasted_iota(jnp.int32, (tile_b, 1), 0)
    valid = rows < batch                                              # (tile_b, 1)

    @pl.when(p == 0)
    def _accumulate():
        tile_max = jnp.max(jnp.where(valid, logits, -jnp.inf), axis=0, keepdims=True)
        m_new = jnp.maximum(m_ref[...], tile_max)                     # (1, 128)
        e = jnp.where(valid, jnp.exp(logits - m_new), 0.0)
        s_ref[...] = s_ref[...] * jnp.exp(m_ref[...] - m_new) + jnp.sum(
            e, axis=0, keepdims=True)
        m_ref[...] = m_new

    @pl.when(p == 1)
    def _write():
        lse = m_ref[...] + jnp.log(s_ref[...])                        # (1, 128)
        o_ref[...] = (logits - lse).astype(o_ref.dtype)


def prepare_params(w1, b1, w2, b2, num_classes=CLASS_NUMBERS, lane=LANE):
    """One-time parameter prep, hoisted out of the forward path:
    transpose to (in, out), zero-pad the class dim 10 -> 128, bf16 weights."""
    w1t = jnp.transpose(w1).astype(jnp.bfloat16)                      # (256, 64)
    b1r = b1.reshape(1, -1).astype(jnp.float32)                       # (1, 64)
    w2t = jnp.zeros((w2.shape[1], lane), jnp.bfloat16)
    w2t = w2t.at[:, :num_classes].set(jnp.transpose(w2).astype(jnp.bfloat16))
    b2r = jnp.zeros((1, lane), jnp.float32).at[:, :num_classes].set(b2)
    return w1t, b1r, w2t, b2r


def net_forward(x, params, num_classes=CLASS_NUMBERS, tile_b=TILE_B):
    """x: (B, 256) f32.  Returns log_softmax(fc2(tanh(fc1(x))), dim=0): (B, num_classes)."""
    w1t, b1r, w2t, b2r = params
    B, in_f = x.shape
    lane = w2t.shape[1]
    n_tiles = pl.cdiv(B, tile_b)
    b_pad = n_tiles * tile_b
    if b_pad != B:
        x = jnp.pad(x, ((0, b_pad - B), (0, 0)))

    kernel = functools.partial(net_kernel, batch=B, tile_b=tile_b)

    out_pad = pl.pallas_call(
        kernel,
        out_shape=jax.ShapeDtypeStruct((b_pad, lane), jnp.float32),
        grid_spec=pltpu.PrefetchScalarGridSpec(
            num_scalar_prefetch=0,
            grid=(2, n_tiles),          # (pass, batch tile); pass is the OUTER loop
            in_specs=[
                pl.BlockSpec((tile_b, in_f), lambda p, i: (i, 0)),    # x tile
                pl.BlockSpec(w1t.shape, lambda p, i: (0, 0)),         # weights stay resident
                pl.BlockSpec(b1r.shape, lambda p, i: (0, 0)),
                pl.BlockSpec(w2t.shape, lambda p, i: (0, 0)),
                pl.BlockSpec(b2r.shape, lambda p, i: (0, 0)),
            ],
            out_specs=pl.BlockSpec((tile_b, lane), lambda p, i: (i, 0)),
            scratch_shapes=[
                pltpu.VMEM((1, lane), jnp.float32),   # running max   per class
                pltpu.VMEM((1, lane), jnp.float32),   # running sumexp per class
            ],
        ),
        compiler_params=pltpu.CompilerParams(
            # Batch axis carries the full-batch LSE reduction and the pass axis is
            # a sequential two-pass loop -> both "arbitrary".
            dimension_semantics=("arbitrary", "arbitrary"),
        ),
    )(x, w1t, b1r, w2t, b2r)

    return out_pad[:B, :num_classes]


# ----------------------------- references (for validation) -----------------------------

def _ref_forward_f32(x, w1, b1, w2, b2):
    """Pure-JAX f32 reference mirroring the PyTorch forward (eval mode)."""
    h = jnp.tanh(x @ w1.T + b1)
    logits = h @ w2.T + b2
    return jax.nn.log_softmax(logits, axis=0)


def _ref_forward_bf16(x, w1, b1, w2, b2):
    """Reference with the same bf16 matmul rounding as the kernel."""
    xb = x.astype(jnp.bfloat16)
    h = jnp.tanh(jnp.dot(xb, w1.T.astype(jnp.bfloat16),
                         preferred_element_type=jnp.float32) + b1)
    logits = jnp.dot(h.astype(jnp.bfloat16), w2.T.astype(jnp.bfloat16),
                     preferred_element_type=jnp.float32) + b2
    return jax.nn.log_softmax(logits, axis=0)


if __name__ == "__main__":
    key = jax.random.PRNGKey(0)
    kx, k1, k2, k3, k4 = jax.random.split(key, 5)

    # B=500: large enough to exercise the batch grid (4 tiles) and not a multiple
    # of the 128-row tile, so the padded-row masking path is exercised too.
    B = 500
    x = jax.random.normal(kx, (B, IN_FEATURES), dtype=jnp.float32)
    w1 = jax.random.uniform(k1, (HIDDEN, IN_FEATURES), jnp.float32, -1.0, 1.0) / jnp.sqrt(IN_FEATURES)
    b1 = jax.random.uniform(k2, (HIDDEN,), jnp.float32, -1.0, 1.0) / jnp.sqrt(IN_FEATURES)
    w2 = jax.random.uniform(k3, (CLASS_NUMBERS, HIDDEN), jnp.float32, -1.0, 1.0) / jnp.sqrt(HIDDEN)
    b2 = jax.random.uniform(k4, (CLASS_NUMBERS,), jnp.float32, -1.0, 1.0) / jnp.sqrt(HIDDEN)

    params = prepare_params(w1, b1, w2, b2)   # one-time prep (transpose/pad/bf16)
    out = jax.block_until_ready(net_forward(x, params))

    assert out.shape == (B, CLASS_NUMBERS)

    ref_bf16 = _ref_forward_bf16(x, w1, b1, w2, b2)
    ref_f32 = _ref_forward_f32(x, w1, b1, w2, b2)
    # Tight check vs a reference with matching bf16 matmul precision.
    assert jnp.allclose(out, ref_bf16, atol=5e-3, rtol=5e-3), "mismatch vs matched-precision reference"
    # Looser sanity check vs the exact f32 / PyTorch-semantics reference.
    assert jnp.allclose(out, ref_f32, atol=1.5e-1, rtol=0.0), "mismatch vs f32 reference"

    print("KERNEL_OK")
</pallas_src>

<mosaic_0001>
module attributes {stable_mosaic.version = 11 : i64} {
  func.func @net_kernel(%arg0: i32, %arg1: i32, %arg2: memref<128x256xf32, #tpu.memory_space<vmem>>, %arg3: memref<256x64xbf16, #tpu.memory_space<vmem>>, %arg4: memref<1x64xf32, #tpu.memory_space<vmem>>, %arg5: memref<64x128xbf16, #tpu.memory_space<vmem>>, %arg6: memref<1x128xf32, #tpu.memory_space<vmem>>, %arg7: memref<128x128xf32, #tpu.memory_space<vmem>>, %arg8: memref<1x128xf32, #tpu.memory_space<vmem>>, %arg9: memref<1x128xf32, #tpu.memory_space<vmem>>) attributes {dimension_semantics = [#tpu.dimension_semantics<arbitrary>, #tpu.dimension_semantics<arbitrary>], iteration_bounds = array<i64: 2, 4>, scalar_prefetch = 0 : i64, scratch_operands = 2 : i64, tpu.core_type = #tpu.core_type<tc>, window_params = [{transform_indices = @transform_0, window_bounds = array<i64: 128, 256>}, {pipeline_mode = #tpu.pipeline_mode<synchronous>, transform_indices = @transform_1, window_bounds = array<i64: 256, 64>}, {pipeline_mode = #tpu.pipeline_mode<synchronous>, transform_indices = @transform_2, window_bounds = array<i64: 1, 64>}, {pipeline_mode = #tpu.pipeline_mode<synchronous>, transform_indices = @transform_3, window_bounds = array<i64: 64, 128>}, {pipeline_mode = #tpu.pipeline_mode<synchronous>, transform_indices = @transform_4, window_bounds = array<i64: 1, 128>}, {transform_indices = @transform_5, window_bounds = array<i64: 128, 128>}]} {
    %c0_i32 = arith.constant 0 : i32
    %0 = arith.cmpi eq, %arg0, %c0_i32 : i32
    %c0_i32_0 = arith.constant 0 : i32
    %1 = arith.cmpi eq, %arg1, %c0_i32_0 : i32
    %2 = arith.andi %0, %1 : i1
    %3 = arith.extui %2 : i1 to i32
    %c0_i32_1 = arith.constant 0 : i32
    %4 = arith.cmpi ne, %3, %c0_i32_1 : i32
    scf.if %4 {
      %cst_15 = arith.constant 0xFF800000 : f32
      %31 = vector.broadcast %cst_15 : f32 to vector<1x128xf32>
      %c0_16 = arith.constant 0 : index
      %c0_17 = arith.constant 0 : index
      %32 = vector.load %arg8[%c0_16, %c0_17] : memref<1x128xf32, #tpu.memory_space<vmem>>, vector<1x128xf32>
      tpu.vector_store %arg8[%c0_16, %c0_17], %31 {strides = array<i32>} : memref<1x128xf32, #tpu.memory_space<vmem>>, vector<1x128xf32>,
      %cst_18 = arith.constant 0.000000e+00 : f32
      %33 = vector.broadcast %cst_18 : f32 to vector<1x128xf32>
      %c0_19 = arith.constant 0 : index
      %c0_20 = arith.constant 0 : index
      %34 = vector.load %arg9[%c0_19, %c0_20] : memref<1x128xf32, #tpu.memory_space<vmem>>, vector<1x128xf32>
      tpu.vector_store %arg9[%c0_19, %c0_20], %33 {strides = array<i32>} : memref<1x128xf32, #tpu.memory_space<vmem>>, vector<1x128xf32>,
    } else {
    }
    %c0 = arith.constant 0 : index
    %c0_2 = arith.constant 0 : index
    %5 = vector.load %arg2[%c0, %c0_2] : memref<128x256xf32, #tpu.memory_space<vmem>>, vector<128x256xf32>
    %6 = arith.truncf %5 : vector<128x256xf32> to vector<128x256xbf16>
    %c0_3 = arith.constant 0 : index
    %c0_4 = arith.constant 0 : index
    %7 = vector.load %arg3[%c0_3, %c0_4] : memref<256x64xbf16, #tpu.memory_space<vmem>>, vector<256x64xbf16>
    %cst = arith.constant dense<0.000000e+00> : vector<128x64xf32>
    %8 = tpu.matmul %6, %7, %cst {dimension_numbers = #tpu.dot_dimension_numbers<[1], [0], [0], [1], [0, 0, 1, 1], [], []>} : vector<128x256xbf16>, vector<256x64xbf16>, vector<128x64xf32> -> vector<128x64xf32>
    %c0_5 = arith.constant 0 : index
    %c0_6 = arith.constant 0 : index
    %9 = vector.load %arg4[%c0_5, %c0_6] : memref<1x64xf32, #tpu.memory_space<vmem>>, vector<1x64xf32>
    %10 = vector.broadcast %9 : vector<1x64xf32> to vector<128x64xf32>
    %11 = arith.addf %8, %10 : vector<128x64xf32>
    %12 = math.tanh %11 : vector<128x64xf32>
    %13 = arith.truncf %12 : vector<128x64xf32> to vector<128x64xbf16>
    %c0_7 = arith.constant 0 : index
    %c0_8 = arith.constant 0 : index
    %14 = vector.load %arg5[%c0_7, %c0_8] : memref<64x128xbf16, #tpu.memory_space<vmem>>, vector<64x128xbf16>
    %cst_9 = arith.constant dense<0.000000e+00> : vector<128x128xf32>
    %15 = tpu.matmul %13, %14, %cst_9 {dimension_numbers = #tpu.dot_dimension_numbers<[1], [0], [0], [1], [0, 0, 1, 1], [], []>} : vector<128x64xbf16>, vector<64x128xbf16>, vector<128x128xf32> -> vector<128x128xf32>
    %c0_10 = arith.constant 0 : index
    %c0_11 = arith.constant 0 : index
    %16 = vector.load %arg6[%c0_10, %c0_11] : memref<1x128xf32, #tpu.memory_space<vmem>>, vector<1x128xf32>
    %17 = vector.broadcast %16 : vector<1x128xf32> to vector<128x128xf32>
    %18 = arith.addf %15, %17 : vector<128x128xf32>
    %c128_i32 = arith.constant 128 : i32
    %19 = arith.muli %arg1, %c128_i32 : i32
    %20 = tpu.iota {dimensions = array<i32: 0>} : vector<128x1xi32>
    %21 = vector.broadcast %19 : i32 to vector<128x1xi32>
    %22 = arith.addi %21, %20 : vector<128x1xi32>
    %c500_i32 = arith.constant 500 : i32
    %23 = vector.broadcast %c500_i32 : i32 to vector<128x1xi32>
    %24 = arith.cmpi slt, %22, %23 : vector<128x1xi32>
    %c0_i32_12 = arith.constant 0 : i32
    %25 = arith.cmpi eq, %arg0, %c0_i32_12 : i32
    %26 = arith.extui %25 : i1 to i32
    %c0_i32_13 = arith.constant 0 : i32
    %27 = arith.cmpi ne, %26, %c0_i32_13 : i32
    scf.if %27 {
      %cst_15 = arith.constant 0xFF800000 : f32
      %31 = vector.shape_cast %24 : vector<128x1xi1> to vector<128x1xi1>
      %32 = vector.broadcast %31 : vector<128x1xi1> to vector<128x128xi1>
      %33 = vector.broadcast %cst_15 : f32 to vector<128x128xf32>
      %34 = arith.select %32, %18, %33 : vector<128x128xi1>, vector<128x128xf32>
      %cst_16 = arith.constant dense<0xFF800000> : vector<128xf32>
      %35 = vector.multi_reduction <maximumf>, %34, %cst_16 [0] : vector<128x128xf32> to vector<128xf32>
      %36 = vector.shape_cast %35 : vector<128xf32> to vector<1x128xf32>
      %c0_17 = arith.constant 0 : index
      %c0_18 = arith.constant 0 : index
      %37 = vector.load %arg8[%c0_17, %c0_18] : memref<1x128xf32, #tpu.memory_space<vmem>>, vector<1x128xf32>
      %38 = arith.maximumf %37, %36 : vector<1x128xf32>
      %39 = vector.broadcast %38 : vector<1x128xf32> to vector<128x128xf32>
      %40 = arith.subf %18, %39 : vector<128x128xf32>
      %41 = math.exp %40 : vector<128x128xf32>
      %cst_19 = arith.constant 0.000000e+00 : f32
      %42 = vector.shape_cast %24 : vector<128x1xi1> to vector<128x1xi1>
      %43 = vector.broadcast %42 : vector<128x1xi1> to vector<128x128xi1>
      %44 = vector.broadcast %cst_19 : f32 to vector<128x128xf32>
      %45 = arith.select %43, %41, %44 : vector<128x128xi1>, vector<128x128xf32>
      %c0_20 = arith.constant 0 : index
      %c0_21 = arith.constant 0 : index
      %46 = vector.load %arg9[%c0_20, %c0_21] : memref<1x128xf32, #tpu.memory_space<vmem>>, vector<1x128xf32>
      %c0_22 = arith.constant 0 : index
      %c0_23 = arith.constant 0 : index
      %47 = vector.load %arg8[%c0_22, %c0_23] : memref<1x128xf32, #tpu.memory_space<vmem>>, vector<1x128xf32>
      %48 = arith.subf %47, %38 : vector<1x128xf32>
      %49 = math.exp %48 : vector<1x128xf32>
      %50 = arith.mulf %46, %49 : vector<1x128xf32>
      %cst_24 = arith.constant dense<0.000000e+00> : vector<128xf32>
      %51 = vector.multi_reduction <add>, %45, %cst_24 [0] : vector<128x128xf32> to vector<128xf32>
      %52 = vector.shape_cast %51 : vector<128xf32> to vector<1x128xf32>
      %53 = arith.addf %50, %52 : vector<1x128xf32>
      %c0_25 = arith.constant 0 : index
      %c0_26 = arith.constant 0 : index
      %54 = vector.load %arg9[%c0_25, %c0_26] : memref<1x128xf32, #tpu.memory_space<vmem>>, vector<1x128xf32>
      tpu.vector_store %arg9[%c0_25, %c0_26], %53 {strides = array<i32>} : memref<1x128xf32, #tpu.memory_space<vmem>>, vector<1x128xf32>,
      %c0_27 = arith.constant 0 : index
      %c0_28 = arith.constant 0 : index
      %55 = vector.load %arg8[%c0_27, %c0_28] : memref<1x128xf32, #tpu.memory_space<vmem>>, vector<1x128xf32>
      tpu.vector_store %arg8[%c0_27, %c0_28], %38 {strides = array<i32>} : memref<1x128xf32, #tpu.memory_space<vmem>>, vector<1x128xf32>,
    } else {
    }
    %c1_i32 = arith.constant 1 : i32
    %28 = arith.cmpi eq, %arg0, %c1_i32 : i32
    %29 = arith.extui %28 : i1 to i32
    %c0_i32_14 = arith.constant 0 : i32
    %30 = arith.cmpi ne, %29, %c0_i32_14 : i32
    scf.if %30 {
      %c0_15 = arith.constant 0 : index
      %c0_16 = arith.constant 0 : index
      %31 = vector.load %arg8[%c0_15, %c0_16] : memref<1x128xf32, #tpu.memory_space<vmem>>, vector<1x128xf32>
      %c0_17 = arith.constant 0 : index
      %c0_18 = arith.constant 0 : index
      %32 = vector.load %arg9[%c0_17, %c0_18] : memref<1x128xf32, #tpu.memory_space<vmem>>, vector<1x128xf32>
      %33 = math.log %32 : vector<1x128xf32>
      %34 = arith.addf %31, %33 : vector<1x128xf32>
      %35 = vector.broadcast %34 : vector<1x128xf32> to vector<128x128xf32>
      %36 = arith.subf %18, %35 : vector<128x128xf32>
      %c0_19 = arith.constant 0 : index
      %c0_20 = arith.constant 0 : index
      %37 = vector.load %arg7[%c0_19, %c0_20] : memref<128x128xf32, #tpu.memory_space<vmem>>, vector<128x128xf32>
      tpu.vector_store %arg7[%c0_19, %c0_20], %36 {strides = array<i32>} : memref<128x128xf32, #tpu.memory_space<vmem>>, vector<128x128xf32>,
    } else {
    }
    return
  }
  func.func @transform_0(%arg0: i32, %arg1: i32) -> (i32, i32) {
    %c0_i32 = arith.constant 0 : i32
    %c0_i32_0 = arith.constant 0 : i32
    return %arg1, %c0_i32 : i32, i32
  }
  func.func @transform_1(%arg0: i32, %arg1: i32) -> (i32, i32) {
    %c0_i32 = arith.constant 0 : i32
    %c0_i32_0 = arith.constant 0 : i32
    %c0_i32_1 = arith.constant 0 : i32
    return %c0_i32, %c0_i32_0 : i32, i32
  }
  func.func @transform_2(%arg0: i32, %arg1: i32) -> (i32, i32) {
    %c0_i32 = arith.constant 0 : i32
    %c0_i32_0 = arith.constant 0 : i32
    %c0_i32_1 = arith.constant 0 : i32
    return %c0_i32, %c0_i32_0 : i32, i32
  }
  func.func @transform_3(%arg0: i32, %arg1: i32) -> (i32, i32) {
    %c0_i32 = arith.constant 0 : i32
    %c0_i32_0 = arith.constant 0 : i32
    %c0_i32_1 = arith.constant 0 : i32
    return %c0_i32, %c0_i32_0 : i32, i32
  }
  func.func @transform_4(%arg0: i32, %arg1: i32) -> (i32, i32) {
    %c0_i32 = arith.constant 0 : i32
    %c0_i32_0 = arith.constant 0 : i32
    %c0_i32_1 = arith.constant 0 : i32
    return %c0_i32, %c0_i32_0 : i32, i32
  }
  func.func @transform_5(%arg0: i32, %arg1: i32) -> (i32, i32) {
    %c0_i32 = arith.constant 0 : i32
    %c0_i32_0 = arith.constant 0 : i32
    return %arg1, %c0_i32 : i32, i32
  }
}

</mosaic_0001>

<bundles_post_ra>
// kernel: tpu_custom_call.1
= control target key start
LH: loop header
LB: loop body
LE: loop exit
PB: predicated region body
PF: predicated region fallthrough
CT: control target
= control target key end

     0   :  { %10 = vsyncpa [#allocation5], 0  ;;  %s2204_s0 = inlined_call_operand.hbm [shape: f32[512,256], index: 0, kind: input, shape index: {}]   ;;  %s2205_s1 = inlined_call_operand.vmem [shape: bf16[256,64], index: 1, kind: input, shape index: {}]   ;;  %s2206_s2 = inlined_call_operand.vmem [shape: f32[1,64], index: 2, kind: input, shape index: {}]   ;;  %s2207_s3 = inlined_call_operand.vmem [shape: bf16[64,128], index: 3, kind: input, shape index: {}]   ;;  %s2208_s4 = inlined_call_operand.vmem [shape: f32[1,128], index: 4, kind: input, shape index: {}]   ;;  %s2209_s5 = inlined_call_operand.hbm [shape: f32[512,128], index: 5, kind: output, shape index: {}]  }
   0x1   :  { %12 = vsyncpa [#allocation5 + $0x1], 0 }
   0x2   :  { %13 = vsyncpa [#allocation6], 0 }
   0x3   :  { %15 = vsyncpa [#allocation6 + $0x1], 0  ;;  %s1609_s18 = smov 0   ;;  %s1611_s19 = smov 0  }
   0x4   :  { %s1613_s20 = smov 0   ;;  %s1615_s21 = smov 0  }
   0x5   :  { %s1617_s22 = smov 0   ;;  %s1619_s23 = smov 0  }
   0x6   :  { %s1621_s24 = smov 0   ;;  %s1623_s25 = smov 0  }
   0x7 LB: > { %s1101_s26 = sadd.s32 4294967295, %s1569_s25   ;;  %s1102_s27 = sadd.s32 4294967294, %s1569_s25   ;;  %s1569_s25 = sphi %s1623_s25, %s21_s25   ;;  %s1565_s24 = sphi %s1621_s24, %s2225_s24   ;;  %s1561_s23 = sphi %s1619_s23, %s2224_s23   ;;  %s1557_s22 = sphi %s1617_s22, %s2223_s22   ;;  %s1553_s21 = sphi %s1615_s21, %s2222_s21   ;;  %s1549_s20 = sphi %s1613_s20, %s2221_s20   ;;  %s1545_s19 = sphi %s1611_s19, %s2220_s19   ;;  %s1541_s18 = sphi %s1609_s18, %s2219_s18  }
   0x8   : > { %s30_s28 = sadd.s32 1, %s1561_s23  ;;  %s33_s29 = sadd.s32 1, %s1565_s24 }
   0x9   : > { %p31_p0 = scmp.ge.s32.totalorder %s30_s28, 4  ;;  %s40_s30 = sadd.s32 1, %s1549_s20 }
   0xa   : > { %p47_p1 = scmp.ne.s32.totalorder %s1549_s20, %s1545_s19  ;;  %p48_p2 = scmp.eq.s32.totalorder %s1569_s25, 0 }
   0xb   : > { %s2227_s28 = smov (%p31_p0, %s30_s28), 0  ;;  %s2229_s29 = smov (!%p31_p0, %s33_s29), %s1565_s24 }
   0xc   : > { %s37_s6 = ssub.s32 %s1561_s23, %s2227_s28  ;;  %p1665_p3 = por %p48_p2, %p47_p1 }
   0xd   : > { %p35_p4 = scmp.ge.s32.totalorder %s2229_s29, 2  ;;  %p38_p5 = scmp.eq.s32.totalorder %s37_s6, 0 }
   0xe   : > { %p53_p6 = scmp.ne.s32.totalorder %s1545_s19, %s1541_s18  ;;  %p54_p7 = scmp.eq.s32.totalorder %s1101_s26, 0 }
   0xf   : > { %s2231_s29 = smov (%p35_p4, %s2229_s29), 0  ;;  %p161_p9 = scmp.eq.s32.totalorder %s1101_s26, 7 }
  0x10   : > { %s1674_s8 = scalar_select %p38_p5, %s1549_s20, %s40_s30  }
  0x11   : > { %p1676_p8 = por %p54_p7, %p53_p6  ;;  %p167_p10 = scmp.eq.s32.totalorder %s1102_s27, 7 }
  0x12   : > { %p1683_p11 = por %p161_p9, %p47_p1  ;;  %p1281_p12 = scmp.lt.s32.totalorder %s1569_s25, 8 }
  0x13   : > { %p1688_p13 = por %p167_p10, %p53_p6  ;;  %s199_s12 = sand.u32 1, %s1549_s20  }
  0x14   : > { %s2213_s10 = scalar_select %p1683_p11, 1, 0 }
  0x15   : > { %s2214_s11 = scalar_select %p1688_p13, 1, 0 }
  0x16   : > { %s1105_s13 = sshll.u32 %s199_s12, 8  ;;  %s1151_s14 = sshll.u32 %s1561_s23, 12 }
  0x17   : > { %s1697_s17 = scalar_lea.hbm %s2204_s0, %s1151_s14  ;;  %s203_s26 = scalar_lea.vmem [#allocation4], %s1105_s13 }
  0x18   : > { %s211_s27 = sshll.u32 %s203_s26, 4  ;;  %p1703_p0 = pnand %p1281_p12, %p1665_p3  ;;  %s1699_s27 = int_to_ptr.vmem [resolvable:$true] %s211_s27 }
  0x19   : > { %s1708_s6 = scalar_lea.sflag [#allocation5], %s199_s12  ;;  %s1441_s14 = scalar_lea.hbm %s1697_s17, 4096 }
  0x1a   : > { %p1442_p2 = scmp.ne.s32.totalorder %s1697_s17, %s1441_s14  ;;  %p1443_p4 = pneg %p1703_p0 }
  0x1b   : > { %s1446_s7 = scalar_lea.hbm %s2204_s0, 16384  ;;  %p1447_p3 = scmp.lt.u32.totalorder %s1697_s17, %s2204_s0 }
  0x1c   : > { %p1444_p5 = pnand %p1443_p4, %p1442_p2  ;;  %p1448_p7 = scmp.lt.u32.totalorder %s1446_s7, %s1441_s14 }
  0x1d   : > { %p1450_p10 = scmp.lt.u32.totalorder %s1441_s14, %s1697_s17 }
  0x1e   : > { %p1445_p6 = pneg %p1444_p5  ;;  %p1449_p9 = por %p1448_p7, %p1447_p3 }
  0x20   : > { %p1451_p12 = por %p1450_p10, %p1449_p9 }
  0x22   : > { %p1452_p1 = pnand %p1451_p12, %p1445_p6 }
  0x24   : > { %1455 = shalt.err (!%p1452_p1)
}
  0x25   : > { %s1456_s12 = scalar_lea.vmem %s1699_s27, 4096  ;;  %s1571_s13 = smov [#allocation4]  }
  0x26   : > { %p1457_p2 = scmp.ne.s32.totalorder %s1699_s27, %s1456_s12  ;;  %s1461_s15 = sshll.u32 %s1571_s13, 4  ;;  %s1462_s15 = int_to_ptr.vmem [resolvable:$false] %s1461_s15 }
  0x27   : > { %s1463_s16 = scalar_lea.vmem %s1462_s15, 8192  ;;  %p1464_p11 = scmp.lt.s32.totalorder %s1699_s27, %s1462_s15 }
  0x28   : > { %p1459_p5 = pnand %p1457_p2, %p1443_p4  ;;  %p1465_p3 = scmp.lt.s32.totalorder %s1463_s16, %s1456_s12 }
  0x2a   : > { %p1460_p13 = pneg %p1459_p5  ;;  %p1466_p7 = por %p1465_p3, %p1464_p11 }
  0x2c   : > { %p1467_p9 = pnand %p1466_p7, %p1460_p13 }
  0x2e   : > { %1470 = shalt.err (!%p1467_p9)
}
  0x2f   : > { %s1572_s14 = smov 256   ;;  %s1573_s7 = smov 16  }
  0x30   : > { %1276 = dma.hbm_to_vmem [thread:$0]  (!%p1703_p0), %s1697_s17, 4096, %s1699_s27, %s1708_s6, %s1572_s14, %s1572_s14, %s1573_s7  }
  0x31   : > { %p219_p1 = scmp.lt.s32.totalorder %s1569_s25, 9  ;;  %p2216_p4 = scmp.ge.s32.totalorder %s1569_s25, 1 }
  0x33   : > { %p220_p6 = pnand %p2216_p4, %p219_p1 }
  0x34   : > { %s1740_s26 = sand.u32 (!%p220_p6), 1, %s1545_s19  }
  0x35   : > { %223 = sbr.rel (%p220_p6) target bundleno = 749 (0x2ed), region = 40  ;;  %s1110_s12 = sshll.u32 (!%p220_p6), %s1740_s26, 8 }
  0x36   : > { %s226_s13 = scalar_lea.sflag (!%p220_p6), [#allocation5], %s1740_s26  ;;  %s1744_s15 = scalar_lea.vmem (!%p220_p6), [#allocation4], %s1110_s12 }
  0x3c   : > { %1532 = dma.done.wait (%p1676_p8), %s226_s13, 4096  }
  0x3d   : > { %1534 = vsyncadd (%p1676_p8), %s226_s13, 4294963200  ;;  %s1111_s17 = sshll.u32 %s1740_s26, 7  ;;  %p259_p11 = scmp.eq.s32.totalorder %s1557_s22, 0 }
  0x3e   : > { %p260_p13 = scmp.eq.s32.totalorder %s1553_s21, 0  ;;  %s1753_s27 = scalar_lea.vmem [#allocation7], %s1111_s17 }
  0x40   : > { %p261_p0 = pnand %p260_p13, %p259_p11 }
  0x41   : > { %v1574_v0 = vmov (!%p261_p0), -inf   ;;  %v1575_v1 = vmov (!%p261_p0), 0.0  }
  0x42   : > { %264 = sbr.rel (%p261_p0) target bundleno = 73 (0x49), region = 48  ;;  %265 = vst [vmem:[#allocation2] sm:$0x1] (!%p261_p0), %v1574_v0  ;;  %266 = vst [vmem:[#allocation3] sm:$0x1] (!%p261_p0), %v1575_v1 }
  0x49 PF: > { %v1353_v2 = vld [vmem:[%s2205_s1 + $0x40] sm:$0xff]   ;;  %v1355_v4 = vld [vmem:[%s2205_s1 + $0x48] sm:$0xff]   ;;  %v1357_v6 = vld [vmem:[%s2205_s1 + $0x50] sm:$0xff]   ;;  %vm610_vm0 = vcmask 523264   ;;  %s1142_s7 = sshll.u32 %s1553_s21, 7  ;;  %p1143_p8 = scmp.ne.s32.totalorder %s1557_s22, 0 }
  0x4a   : > { %v1354_v3 = vld [vmem:[%s2205_s1] sm:$0xff]   ;;  %1153 = vmatprep.subr.bf16.mxu0 %v1353_v2  ;;  %1253 = vmatprep.subr.bf16.mxu1 %v1353_v2  ;;  %v1356_v5 = vld [vmem:[%s2205_s1 + $0x8] sm:$0xff]   ;;  %v1358_v7 = vld [vmem:[%s2205_s1 + $0x10] sm:$0xff]  }
  0x4b   : > { %1154 = vmatpush3.bf16.msra.mxu0 %v1354_v3  ;;  %1261 = vmatpush3.bf16.msra.mxu1 %v1354_v3  ;;  %v1359_v8 = vld [vmem:[%s2205_s1 + $0x58] sm:$0xff]   ;;  %v1361_v10 = vld [vmem:[%s2205_s1 + $0x60] sm:$0xff]   ;;  %v1363_v12 = vld [vmem:[%s2205_s1 + $0x68] sm:$0xff]  }
  0x4c   : > { %1155 = vmatprep.subr.bf16.mxu0 %v1355_v4  ;;  %1254 = vmatprep.subr.bf16.mxu1 %v1355_v4  ;;  %v1360_v9 = vld [vmem:[%s2205_s1 + $0x18] sm:$0xff]   ;;  %v1362_v11 = vld [vmem:[%s2205_s1 + $0x20] sm:$0xff]   ;;  %v268_v13 = vld [vmem:[%s1744_s15 + $0x8] sm:$0xff] }
  0x4d   : > { %v270_v14 = vld [vmem:[%s1744_s15 + $0x18] sm:$0xff]  ;;  %v1364_v16 = vld [vmem:[%s2205_s1 + $0x28] sm:$0xff]   ;;  %v1365_v17 = vld [vmem:[%s2205_s1 + $0x70] sm:$0xff]  }
  0x4e   : > { %v300_v15 = vpack.c.bf16 %v270_v14, %v268_v13  ;;  %v292_v18 = vld [vmem:[%s1744_s15 + $0xc8] sm:$0xff]  ;;  %v294_v20 = vld [vmem:[%s1744_s15 + $0xd8] sm:$0xff]  ;;  %v267_v24 = vld [vmem:[%s1744_s15] sm:$0xff] }
  0x4f   : > { %1156 = vmatpush3.bf16.msra.mxu0 %v1356_v5  ;;  %1262 = vmatpush3.bf16.msra.mxu1 %v1356_v5  ;;  %v1366_v19 = vld [vmem:[%s2205_s1 + $0x30] sm:$0xff]   ;;  %v1367_v21 = vld [vmem:[%s2205_s1 + $0x78] sm:$0xff]   ;;  %v312_v22 = vpack.c.bf16 %v294_v20, %v292_v18  ;;  %v291_v28 = vld [vmem:[%s1744_s15 + $0xc0] sm:$0xff] }
  0x50   : > { %1157 = vmatprep.subr.bf16.mxu0 %v1357_v6  ;;  %1255 = vmatprep.subr.bf16.mxu1 %v1357_v6  ;;  %v1368_v23 = vld [vmem:[%s2205_s1 + $0x38] sm:$0xff]   ;;  %v272_v26 = vld [vmem:[%s1744_s15 + $0x28] sm:$0xff]  ;;  %v271_v36 = vld [vmem:[%s1744_s15 + $0x20] sm:$0xff] }
  0x51   : > { %482 = vmatprep.mubr.bf16.mxu0 %v300_v15  ;;  %v269_v25 = vld [vmem:[%s1744_s15 + $0x10] sm:$0xff]  ;;  %v274_v27 = vld [vmem:[%s1744_s15 + $0x38] sm:$0xff]  ;;  %530 = vmatprep.mubr.bf16.mxu1 %v312_v22  ;;  %v296_v30 = vld [vmem:[%s1744_s15 + $0xe8] sm:$0xff] }
  0x52   : > { %v293_v29 = vld [vmem:[%s1744_s15 + $0xd0] sm:$0xff]  ;;  %v298_v31 = vld [vmem:[%s1744_s15 + $0xf8] sm:$0xff]  ;;  %v299_v32 = vpack.c.bf16 %v269_v25, %v267_v24  ;;  %v302_v33 = vpack.c.bf16 %v274_v27, %v272_v26  ;;  %v276_v38 = vld [vmem:[%s1744_s15 + $0x48] sm:$0xff] }
  0x53   : > { %1158 = vmatpush3.bf16.msra.mxu0 %v1358_v7  ;;  %1263 = vmatpush3.bf16.msra.mxu1 %v1358_v7  ;;  %v311_v34 = vpack.c.bf16 %v293_v29, %v291_v28  ;;  %v314_v35 = vpack.c.bf16 %v298_v31, %v296_v30  ;;  %v273_v37 = vld [vmem:[%s1744_s15 + $0x30] sm:$0xff]  ;;  %v278_v39 = vld [vmem:[%s1744_s15 + $0x58] sm:$0xff]  ;;  %v295_v40 = vld [vmem:[%s1744_s15 + $0xe0] sm:$0xff] }
  0x54   : > { %1159 = vmatprep.subr.bf16.mxu0 %v1359_v8  ;;  %1256 = vmatprep.subr.bf16.mxu1 %v1359_v8  ;;  %v297_v41 = vld [vmem:[%s1744_s15 + $0xf0] sm:$0xff]  ;;  %v301_v42 = vpack.c.bf16 %v273_v37, %v271_v36  ;;  %v304_v43 = vpack.c.bf16 %v278_v39, %v276_v38  ;;  %v275_v45 = vld [vmem:[%s1744_s15 + $0x40] sm:$0xff]  ;;  %v280_v47 = vld [vmem:[%s1744_s15 + $0x68] sm:$0xff] }
  0x55   : > { %v313_v44 = vpack.c.bf16 %v297_v41, %v295_v40  ;;  %v277_v46 = vld [vmem:[%s1744_s15 + $0x50] sm:$0xff]  ;;  %v282_v48 = vld [vmem:[%s1744_s15 + $0x78] sm:$0xff]  ;;  %v279_v51 = vld [vmem:[%s1744_s15 + $0x60] sm:$0xff] }
  0x56   : > { %v303_v49 = vpack.c.bf16 %v277_v46, %v275_v45  ;;  %v306_v50 = vpack.c.bf16 %v282_v48, %v280_v47  ;;  %v281_v52 = vld [vmem:[%s1744_s15 + $0x70] sm:$0xff]  ;;  %v284_v53 = vld [vmem:[%s1744_s15 + $0x88] sm:$0xff]  ;;  %v286_v54 = vld [vmem:[%s1744_s15 + $0x98] sm:$0xff] }
  0x57   : > { %1160 = vmatpush3.bf16.msra.mxu0 %v1360_v9  ;;  %1264 = vmatpush3.bf16.msra.mxu1 %v1360_v9  ;;  %v305_v55 = vpack.c.bf16 %v281_v52, %v279_v51  ;;  %v308_v56 = vpack.c.bf16 %v286_v54, %v284_v53  ;;  %v283_v57 = vld [vmem:[%s1744_s15 + $0x80] sm:$0xff]  ;;  %v285_v58 = vld [vmem:[%s1744_s15 + $0x90] sm:$0xff]  ;;  %v288_v59 = vld [vmem:[%s1744_s15 + $0xa8] sm:$0xff] }
  0x58   : > { %1161 = vmatprep.subr.bf16.mxu0 %v1361_v10  ;;  %1257 = vmatprep.subr.bf16.mxu1 %v1361_v10  ;;  %v290_v60 = vld [vmem:[%s1744_s15 + $0xb8] sm:$0xff]  ;;  %v307_v61 = vpack.c.bf16 %v285_v58, %v283_v57  ;;  %v287_v63 = vld [vmem:[%s1744_s15 + $0xa0] sm:$0xff]  ;;  %v289_v0 = vld [vmem:[%s1744_s15 + $0xb0] sm:$0xff] }
  0x59   : > { %v310_v62 = vpack.c.bf16 %v290_v60, %v288_v59  ;;  %v309_v1 = vpack.c.bf16 %v289_v0, %v287_v63  ;;  %v1369_v2 = vld [vmem:[%s2207_s3] sm:$0xff]   ;;  %v1370_v3 = vld [vmem:[%s2207_s3 + $0x8] sm:$0xff]   ;;  %v1371_v4 = vld [vmem:[%s2207_s3 + $0x10] sm:$0xff]  }
  0x5a   : > { %v1372_v5 = vld [vmem:[%s2207_s3 + $0x18] sm:$0xff]   ;;  %v1850_v7 = vld [vmem:[%s2206_s2] ss:$0 sm:$0xff] }
  0x5b   : > { %1162 = vmatpush3.bf16.msra.mxu0 %v1362_v11  ;;  %1265 = vmatpush3.bf16.msra.mxu1 %v1362_v11 }
  0x5c   : > { %1163 = vmatprep.subr.bf16.mxu0 %v1363_v12  ;;  %1258 = vmatprep.subr.bf16.mxu1 %v1363_v12 }
  0x5f   : > { %1164 = vmatpush3.bf16.msra.mxu0 %v1364_v16  ;;  %1266 = vmatpush3.bf16.msra.mxu1 %v1364_v16 }
  0x60   : > { %1165 = vmatprep.subr.bf16.mxu0 %v1365_v17  ;;  %1259 = vmatprep.subr.bf16.mxu1 %v1365_v17 }
  0x63   : > { %1166 = vmatpush3.bf16.msra.mxu0 %v1366_v19  ;;  %1267 = vmatpush3.bf16.msra.mxu1 %v1366_v19 }
  0x64   : > { %1167 = vmatprep.subr.bf16.mxu0 %v1367_v21  ;;  %1260 = vmatprep.subr.bf16.mxu1 %v1367_v21 }
  0x67   : > { %1168 = vmatpush3.bf16.msra.mxu0 %v1368_v23  ;;  %1268 = vmatpush3.bf16.msra.mxu1 %v1368_v23 }
  0x68   : > { %1229 = vmatprep.subr.bf16.mxu1 %v1369_v2 }
  0x6a   : > { %483 = vmatmul.mubr.bf16.vlgmr.msra.gmra.mrb[0].mxu0 %v299_v32  ;;  %531 = vmatmul.mubr.bf16.vlgmr.msra.gmra.mrb[0].mxu1 %v311_v34 }
  0x6b   : > { %490 = vmatprep.mubr.bf16.mxu0 %v302_v33  ;;  %538 = vmatprep.mubr.bf16.mxu1 %v314_v35 }
  0x6c   : > { %1230 = vmatpush3.bf16.msra.mxu1 %v1369_v2 }
  0x6d   : > { %1231 = vmatprep.subr.bf16.mxu1 %v1370_v3 }
  0x70   : > { %1232 = vmatpush3.bf16.msra.mxu1 %v1370_v3 }
  0x71   : > { %1233 = vmatprep.subr.bf16.mxu1 %v1371_v4 }
  0x72   : > { %491 = vmatmul.mubr.bf16.gmra.mrb[4].mxu0 %v301_v42  ;;  %539 = vmatmul.mubr.bf16.gmra.mrb[4].mxu1 %v313_v44 }
  0x73   : > { %498 = vmatprep.mubr.bf16.mxu0 %v304_v43 }
  0x74   : > { %1234 = vmatpush3.bf16.msra.mxu1 %v1371_v4 }
  0x75   : > { %1235 = vmatprep.subr.bf16.mxu1 %v1372_v5 }
  0x78   : > { %1236 = vmatpush3.bf16.msra.mxu1 %v1372_v5 }
  0x7a   : > { %499 = vmatmul.mubr.bf16.gmra.mrb[8].mxu0 %v303_v49 }
  0x7b   : > { %506 = vmatprep.mubr.bf16.mxu0 %v306_v50 }
  0x82   : > { %507 = vmatmul.mubr.bf16.gmra.mrb[12].mxu0 %v305_v55 }
  0x83   : > { %514 = vmatprep.mubr.bf16.mxu0 %v308_v56 }
  0x8a   : > { %515 = vmatmul.mubr.bf16.gmra.mrb[16].mxu0 %v307_v61 }
  0x8b   : > { %522 = vmatprep.mubr.bf16.mxu0 %v310_v62 }
  0x92   : > { %523 = vmatmul.mubr.bf16.gmra.mrb[20].mxu0 %v309_v1 }
 0x13d   : > { %v1169_v6 = vpop.f32.mrb[0].mxu0  ;;  %v1205_v9 = vpop.f32.mrb[0].mxu1 }
 0x13e   : > { %v1170_v8 = vpop.f32.mrb[1].mxu0  ;;  %v1206_v12 = vpop.f32.mrb[1].mxu1 }
 0x13f   : > { %v1171_v10 = vadd.f32 %v1170_v8, %v1169_v6  ;;  %v1172_v11 = vpop.f32.mrb[2].mxu0  ;;  %v1207_v14 = vadd.f32 %v1206_v12, %v1205_v9  ;;  %v1208_v15 = vpop.f32.mrb[2].mxu1 }
 0x140   : > { %v1173_v13 = vpop.f32.mrb[3].mxu0  ;;  %v1209_v18 = vpop.f32.mrb[3].mxu1 }
 0x141   : > { %v485_v16 = vadd.f32 %v1171_v10, %v1850_v7  ;;  %v1174_v17 = vadd.f32 %v1173_v13, %v1172_v11  ;;  %v533_v19 = vadd.f32 %v1207_v14, %v1850_v7  ;;  %v1210_v20 = vadd.f32 %v1209_v18, %v1208_v15 }
 0x143   : > { %1373 = vtanh.f32 %v485_v16  ;;  %v488_v21 = vadd.f32 %v1174_v17, %v1850_v7  ;;  %v536_v22 = vadd.f32 %v1210_v20, %v1850_v7 }
 0x144   : > { %1375 = vtanh.f32 %v533_v19 }
 0x145   : > { %1377 = vtanh.f32 %v488_v21  ;;  %v1175_v23 = vpop.f32.mrb[4].mxu0  ;;  %v1211_v25 = vpop.f32.mrb[4].mxu1 }
 0x146   : > { %v1176_v24 = vpop.f32.mrb[5].mxu0  ;;  %1379 = vtanh.f32 %v536_v22  ;;  %v1212_v28 = vpop.f32.mrb[5].mxu1 }
 0x147   : > { %v1177_v26 = vadd.f32 %v1176_v24, %v1175_v23  ;;  %v1178_v27 = vpop.f32.mrb[6].mxu0  ;;  %v1213_v30 = vadd.f32 %v1212_v28, %v1211_v25  ;;  %v1214_v31 = vpop.f32.mrb[6].mxu1 }
 0x148   : > { %v1179_v29 = vpop.f32.mrb[7].mxu0  ;;  %v1215_v34 = vpop.f32.mrb[7].mxu1 }
 0x149   : > { %v493_v32 = vadd.f32 %v1177_v26, %v1850_v7  ;;  %v1180_v33 = vadd.f32 %v1179_v29, %v1178_v27  ;;  %v541_v35 = vadd.f32 %v1213_v30, %v1850_v7  ;;  %v1216_v36 = vadd.f32 %v1215_v34, %v1214_v31 }
 0x14b   : > { %1381 = vtanh.f32 %v493_v32  ;;  %v496_v37 = vadd.f32 %v1180_v33, %v1850_v7  ;;  %v544_v38 = vadd.f32 %v1216_v36, %v1850_v7  ;;  %v733_v32 = vlaneseq }
 0x14c   : > { %1383 = vtanh.f32 %v541_v35 }
 0x14d   : > { %v1374_v39 = vpop.eup %1373  ;;  %1385 = vtanh.f32 %v496_v37  ;;  %v1181_v40 = vpop.f32.mrb[8].mxu0  ;;  %v1882_v33 = vshrl.u32 %v733_v32, 7 }
 0x14e   : > { %v1860_v41 = vpop.eup %1375  ;;  %v1182_v42 = vpop.f32.mrb[9].mxu0  ;;  %1387 = vtanh.f32 %v544_v38 }
 0x14f   : > { %v1378_v43 = vpop.eup %1377  ;;  %v1183_v44 = vadd.f32 %v1182_v42, %v1181_v40  ;;  %v1184_v45 = vpop.f32.mrb[10].mxu0  ;;  %v736_v34 = vadd.s32 16, %v1882_v33  ;;  %v737_v35 = vadd.s32 24, %v1882_v33  ;;  %v738_v36 = vadd.s32 32, %v1882_v33 }
 0x150   : > { %v1862_v46 = vpop.eup %1379  ;;  %v1185_v47 = vpop.f32.mrb[11].mxu0  ;;  %v563_v48 = vpack.c.bf16 %v1378_v43, %v1374_v39  ;;  %v739_v37 = vadd.s32 40, %v1882_v33  ;;  %v740_v38 = vadd.s32 48, %v1882_v33  ;;  %v741_v39 = vadd.s32 56, %v1882_v33 }
 0x151   : > { %v501_v49 = vadd.f32 %v1183_v44, %v1850_v7  ;;  %v1186_v50 = vadd.f32 %v1185_v47, %v1184_v45  ;;  %v569_v51 = vpack.c.bf16 %v1862_v46, %v1860_v41  ;;  %v742_v40 = vadd.s32 64, %v1882_v33 }
 0x152   : > { %1237 = vmatprep.mubr.msk.bf16.mxu1 %vm610_vm0, %v563_v48  ;;  %v743_v41 = vadd.s32 72, %v1882_v33  ;;  %v744_v42 = vadd.s32 80, %v1882_v33  ;;  %v745_v43 = vadd.s32 88, %v1882_v33  ;;  %v746_v44 = vadd.s32 96, %v1882_v33 }
 0x153   : > { %v504_v52 = vadd.f32 %v1186_v50, %v1850_v7  ;;  %1389 = vtanh.f32 %v501_v49  ;;  %v747_v45 = vadd.s32 104, %v1882_v33  ;;  %v748_v46 = vadd.s32 112, %v1882_v33 }
 0x154   : > { %v749_v47 = vadd.s32 120, %v1882_v33  ;;  %v750_v48 = vstv %s1142_s7 }
 0x155   : > { %v1382_v53 = vpop.eup %1381  ;;  %1391 = vtanh.f32 %v504_v52  ;;  %v1187_v54 = vpop.f32.mrb[12].mxu0  ;;  %v1901_v49 = vadd.s32 %v750_v48, %v1882_v33  ;;  %v1907_v52 = vadd.s32 %v750_v48, %v737_v35 }
 0x156   : > { %v1384_v55 = vpop.eup %1383  ;;  %v1188_v56 = vpop.f32.mrb[13].mxu0 }
 0x157   : > { %v1386_v57 = vpop.eup %1385  ;;  %v1189_v58 = vadd.f32 %v1188_v56, %v1187_v54  ;;  %v1190_v59 = vpop.f32.mrb[14].mxu0  ;;  %v1911_v54 = vadd.s32 %v750_v48, %v739_v37  ;;  %v1915_v56 = vadd.s32 %v750_v48, %v741_v39  ;;  %vm767_vm1 = vcmp.lt.s32.totalorder %v1901_v49, 500 }
 0x158   : > { %v1388_v60 = vpop.eup %1387  ;;  %v564_v61 = vpack.c.bf16 %v1386_v57, %v1382_v53  ;;  %v1191_v62 = vpop.f32.mrb[15].mxu0  ;;  %v1909_v53 = vadd.s32 %v750_v48, %v738_v36  ;;  %v1917_v57 = vadd.s32 %v750_v48, %v742_v40  ;;  %vm770_vm4 = vcmp.lt.s32.totalorder %v1907_v52, 500 }
 0x159   : > { %v509_v63 = vadd.f32 %v1189_v58, %v1850_v7  ;;  %v1192_v0 = vadd.f32 %v1191_v62, %v1190_v59  ;;  %v570_v1 = vpack.c.bf16 %v1388_v60, %v1384_v55  ;;  %v1913_v55 = vadd.s32 %v750_v48, %v740_v38 }
 0x15a   : > { %1238 = vmatmul.mubr.msk.bf16.vlgmr.msra.gmra.mrb[8].mxu1 %vm610_vm0, %v564_v61  ;;  %v1919_v58 = vadd.s32 %v750_v48, %v743_v41  ;;  %v1921_v59 = vadd.s32 %v750_v48, %v744_v42  ;;  %v1923_v60 = vadd.s32 %v750_v48, %v745_v43  ;;  %v1925_v61 = vadd.s32 %v750_v48, %v746_v44 }
 0x15b   : > { %v512_v2 = vadd.f32 %v1192_v0, %v1850_v7  ;;  %1393 = vtanh.f32 %v509_v63  ;;  %v1927_v62 = vadd.s32 %v750_v48, %v747_v45  ;;  %v1929_v63 = vadd.s32 %v750_v48, %v748_v46 }
 0x15c   : > { %v1931_v0 = vadd.s32 %v750_v48, %v749_v47  ;;  %vm771_vm5 = vcmp.lt.s32.totalorder %v1909_v53, 500  ;;  %vm772_vm6 = vcmp.lt.s32.totalorder %v1911_v54, 500  ;;  %vm773_vm7 = vcmp.lt.s32.totalorder %v1913_v55, 500 }
 0x15d   : > { %1395 = vtanh.f32 %v512_v2  ;;  %v1193_v3 = vpop.f32.mrb[16].mxu0  ;;  %v1390_v4 = vpop.eup %1389  ;;  %vm774_vm8 = vcmp.lt.s32.totalorder %v1915_v56, 500  ;;  %vm775_vm9 = vcmp.lt.s32.totalorder %v1917_v57, 500  ;;  %vm776_vm10 = vcmp.lt.s32.totalorder %v1919_v58, 500 }
 0x15e   : > { %v1194_v5 = vpop.f32.mrb[17].mxu0  ;;  %vm777_vm11 = vcmp.lt.s32.totalorder %v1921_v59, 500  ;;  %vm778_vm12 = vcmp.lt.s32.totalorder %v1923_v60, 500  ;;  %vm779_vm13 = vcmp.lt.s32.totalorder %v1925_v61, 500  ;;  %vm780_vm14 = vcmp.lt.s32.totalorder %v1927_v62, 500 }
 0x15f   : > { %v1392_v6 = vpop.eup %1391  ;;  %v1195_v8 = vadd.f32 %v1194_v5, %v1193_v3  ;;  %v1196_v9 = vpop.f32.mrb[18].mxu0  ;;  %vm781_vm15 = vcmp.lt.s32.totalorder %v1929_v63, 500 }
 0x160   : > { %v1197_v10 = vpop.f32.mrb[19].mxu0  ;;  %v565_v11 = vpack.c.bf16 %v1392_v6, %v1390_v4 }
 0x161   : > { %v517_v12 = vadd.f32 %v1195_v8, %v1850_v7  ;;  %v1198_v13 = vadd.f32 %v1197_v10, %v1196_v9 }
 0x162   : > { %1241 = vmatprep.mubr.msk.bf16.mxu1 %vm610_vm0, %v565_v11 }
 0x163   : > { %v520_v14 = vadd.f32 %v1198_v13, %v1850_v7  ;;  %1397 = vtanh.f32 %v517_v12 }
 0x165   : > { %1399 = vtanh.f32 %v520_v14  ;;  %v1199_v15 = vpop.f32.mrb[20].mxu0  ;;  %v1394_v16 = vpop.eup %1393 }
 0x166   : > { %v1200_v17 = vpop.f32.mrb[21].mxu0 }
 0x167   : > { %v1396_v18 = vpop.eup %1395  ;;  %v1201_v19 = vadd.f32 %v1200_v17, %v1199_v15  ;;  %v1202_v20 = vpop.f32.mrb[22].mxu0 }
 0x168   : > { %v1203_v21 = vpop.f32.mrb[23].mxu0  ;;  %v566_v22 = vpack.c.bf16 %v1396_v18, %v1394_v16 }
 0x169   : > { %v525_v23 = vadd.f32 %v1201_v19, %v1850_v7  ;;  %v1204_v24 = vadd.f32 %v1203_v21, %v1202_v20 }
 0x16a   : > { %1242 = vmatmul.mubr.msk.bf16.gmra.mrb[12].mxu1 %vm610_vm0, %v566_v22 }
 0x16b   : > { %v528_v25 = vadd.f32 %v1204_v24, %v1850_v7  ;;  %1401 = vtanh.f32 %v525_v23  ;;  %v735_v7 = vadd.s32 8, %v1882_v33 }
 0x16d   : > { %1403 = vtanh.f32 %v528_v25  ;;  %v1398_v26 = vpop.eup %1397  ;;  %v1903_v50 = vadd.s32 %v750_v48, %v735_v7 }
 0x16f   : > { %v1400_v27 = vpop.eup %1399  ;;  %vm768_vm2 = vcmp.lt.s32.totalorder %v1903_v50, 500 }
 0x170   : > { %v567_v28 = vpack.c.bf16 %v1400_v27, %v1398_v26 }
 0x172   : > { %1245 = vmatprep.mubr.msk.bf16.mxu1 %vm610_vm0, %v567_v28 }
 0x175   : > { %v1402_v29 = vpop.eup %1401 }
 0x177   : > { %v1404_v30 = vpop.eup %1403 }
 0x178   : > { %v568_v31 = vpack.c.bf16 %v1404_v30, %v1402_v29 }
 0x17a   : > { %1246 = vmatmul.mubr.msk.bf16.gmra.mrb[16].mxu1 %vm610_vm0, %v568_v31 }
 0x17b   : > { %1249 = vmatprep.mubr.msk.bf16.mxu1 %vm610_vm0, %v569_v51  ;;  %v1905_v51 = vadd.s32 %v750_v48, %v736_v34 }
 0x17d   : > { %vm769_vm3 = vcmp.lt.s32.totalorder %v1905_v51, 500 }
 0x182   : > { %1250 = vmatmul.mubr.msk.bf16.gmra.mrb[20].mxu1 %vm610_vm0, %v570_v1  ;;  %vm782_vm0 = vcmp.lt.s32.totalorder %v1931_v0, 500  ;;  %v1129_v1 = vld [vmem:[%s2208_s4] ss:$0 sm:$0xff] }
 0x22d   : > { %v1239_v2 = vpop.f32.mrb[8].mxu1 }
 0x22e   : > { %v1952_v3 = vadd.f32 %v1239_v2, %v1129_v1  ;;  %v669_v4 = vpop.f32.mrb[9].mxu1 }
 0x22f   : > { %v1954_v5 = vadd.f32 %v1129_v1, %v669_v4  ;;  %v1240_v6 = vpop.f32.mrb[10].mxu1 }
 0x230   : > { %v1956_v8 = vadd.f32 %v1240_v6, %v1129_v1  ;;  %v672_v9 = vpop.f32.mrb[11].mxu1  ;;  %v820_v37 = vsel (!%p1143_p8), %vm769_vm3, %v1952_v3, -inf }
 0x231   : > { %v1958_v10 = vadd.f32 %v1129_v1, %v672_v9  ;;  %v818_v35 = vsel (!%p1143_p8), %vm767_vm1, %v1954_v5, -inf }
 0x232   : > { %v821_v38 = vsel (!%p1143_p8), %vm770_vm4, %v1956_v8, -inf }
 0x233   : > { %v819_v36 = vsel (!%p1143_p8), %vm768_vm2, %v1958_v10, -inf }
 0x23d   : > { %v1243_v11 = vpop.f32.mrb[12].mxu1 }
 0x23e   : > { %v1960_v12 = vadd.f32 %v1243_v11, %v1129_v1  ;;  %v685_v13 = vpop.f32.mrb[13].mxu1 }
 0x23f   : > { %v1962_v14 = vadd.f32 %v1129_v1, %v685_v13  ;;  %v1244_v15 = vpop.f32.mrb[14].mxu1 }
 0x240   : > { %v1964_v16 = vadd.f32 %v1244_v15, %v1129_v1  ;;  %v688_v17 = vpop.f32.mrb[15].mxu1  ;;  %v824_v41 = vsel (!%p1143_p8), %vm773_vm7, %v1960_v12, -inf }
 0x241   : > { %v1966_v18 = vadd.f32 %v1129_v1, %v688_v17  ;;  %v822_v39 = vsel (!%p1143_p8), %vm771_vm5, %v1962_v14, -inf }
 0x242   : > { %v825_v42 = vsel (!%p1143_p8), %vm774_vm8, %v1964_v16, -inf  ;;  %v834_v47 = vmax.f32 (!%p1143_p8), %v818_v35, %v822_v39 }
 0x243   : > { %v823_v40 = vsel (!%p1143_p8), %vm772_vm6, %v1966_v18, -inf  ;;  %v837_v2 = vmax.f32 (!%p1143_p8), %v821_v38, %v825_v42  ;;  %v860_v42 = vsub.s32 (!%p1143_p8), 0, %v1882_v33 }
 0x244   : > { %v835_v48 = vmax.f32 (!%p1143_p8), %v819_v36, %v823_v40  ;;  %v2033_v40 = vld [vmem:[#allocation2] sm:$0x1] (!%p1143_p8) }
 0x24d   : > { %v1247_v19 = vpop.f32.mrb[16].mxu1 }
 0x24e   : > { %v1968_v20 = vadd.f32 %v1247_v19, %v1129_v1  ;;  %v701_v21 = vpop.f32.mrb[17].mxu1 }
 0x24f   : > { %v1970_v22 = vadd.f32 %v1129_v1, %v701_v21  ;;  %v1248_v23 = vpop.f32.mrb[18].mxu1 }
 0x250   : > { %v1972_v24 = vadd.f32 %v1248_v23, %v1129_v1  ;;  %v704_v25 = vpop.f32.mrb[19].mxu1  ;;  %v828_v45 = vsel (!%p1143_p8), %vm777_vm11, %v1968_v20, -inf }
 0x251   : > { %v1974_v26 = vadd.f32 %v1129_v1, %v704_v25  ;;  %v826_v43 = vsel (!%p1143_p8), %vm775_vm9, %v1970_v22, -inf }
 0x252   : > { %v829_v46 = vsel (!%p1143_p8), %vm778_vm12, %v1972_v24, -inf  ;;  %v838_v13 = vmax.f32 (!%p1143_p8), %v834_v47, %v826_v43 }
 0x253   : > { %785 = sbr.rel (%p1143_p8) target bundleno = 689 (0x2b1), region = 52  ;;  %v827_v44 = vsel (!%p1143_p8), %vm776_vm10, %v1974_v26, -inf  ;;  %v841_v19 = vmax.f32 (!%p1143_p8), %v837_v2, %v829_v46 }
 0x254   : > { %v839_v15 = vmax.f32 (!%p1143_p8), %v835_v48, %v827_v44 }
 0x255   : > { %v1251_v27 = vpop.f32.mrb[20].mxu1 }
 0x256   : > { %v1976_v28 = vadd.f32 %v1251_v27, %v1129_v1  ;;  %v717_v29 = vpop.f32.mrb[21].mxu1 }
 0x257   : > { %v1978_v30 = vadd.f32 %v1129_v1, %v717_v29  ;;  %v1252_v31 = vpop.f32.mrb[22].mxu1 }
 0x258   : > { %v1980_v32 = vadd.f32 %v1252_v31, %v1129_v1  ;;  %v720_v7 = vpop.f32.mrb[23].mxu1  ;;  %v832_v9 = vsel (!%p1143_p8), %vm781_vm15, %v1976_v28, -inf }
 0x259   : > { %v1982_v34 = vadd.f32 %v1129_v1, %v720_v7  ;;  %v836_v1 = vmax.f32 (!%p1143_p8), %v820_v37, %v824_v41  ;;  %v830_v4 = vsel (!%p1143_p8), %vm779_vm13, %v1978_v30, -inf }
 0x25a   : > { %v833_v11 = vsel %vm782_vm0, %v1980_v32, -inf  ;;  %v842_v21 = vmax.f32 %v838_v13, %v830_v4 }
 0x25b   : > { %v831_v6 = vsel %vm780_vm14, %v1982_v34, -inf  ;;  %v840_v17 = vmax.f32 %v836_v1, %v828_v45  ;;  %v845_v27 = vmax.f32 %v841_v19, %v833_v11 }
 0x25c   : > { %v843_v23 = vmax.f32 %v839_v15, %v831_v6 }
 0x25d   : > { %v844_v25 = vmax.f32 %v840_v17, %v832_v9 }
 0x25e   : > { %v846_v29 = vmax.f32 %v842_v21, %v843_v23 }
 0x25f   : > { %v847_v31 = vmax.f32 %v844_v25, %v845_v27 }
 0x261   : > { %v848_v7 = vmax.f32 %v846_v29, %v847_v31 }
 0x263   : > { %v849_v35 = vrot.slane %v848_v7, 4 }
 0x265   : > { %v850_v36 = vmax.f32 %v848_v7, %v849_v35 }
 0x267   : > { %v851_v37 = vrot.slane %v850_v36, 2 }
 0x269   : > { %v852_v38 = vmax.f32 %v850_v36, %v851_v37 }
 0x26b   : > { %v853_v39 = vrot.slane %v852_v38, 1 }
 0x26d   : > { %v854_v41 = vmax.f32 %v852_v38, %v853_v39 }
 0x26f   : > { %v2037_v43 = vmax.f32 %v2033_v40, %v854_v41 }
 0x271   : > { %v2040_v44 = vrot.slane %v2037_v43, %v860_v42  ;;  %955 = vst [vmem:[#allocation2] sm:$0x1] %v2037_v43  ;;  %v928_v57 = vsub.f32 %v2033_v40, %v2037_v43 }
 0x273   : > { %v863_v45 = vsub.f32 %v1954_v5, %v2040_v44  ;;  %v864_v46 = vsub.f32 %v1958_v10, %v2040_v44  ;;  %v865_v47 = vsub.f32 %v1952_v3, %v2040_v44  ;;  %v866_v48 = vsub.f32 %v1956_v8, %v2040_v44 }
 0x274   : > { %v867_v1 = vsub.f32 %v1962_v14, %v2040_v44  ;;  %v868_v2 = vsub.f32 %v1966_v18, %v2040_v44  ;;  %v869_v11 = vsub.f32 %v1960_v12, %v2040_v44  ;;  %v870_v17 = vsub.f32 %v1964_v16, %v2040_v44 }
 0x275   : > { %v879_v4 = vmul.f32 1.442695, %v863_v45  ;;  %v881_v6 = vmul.f32 1.442695, %v864_v46  ;;  %v883_v9 = vmul.f32 1.442695, %v865_v47  ;;  %v871_v21 = vsub.f32 %v1970_v22, %v2040_v44 }
 0x276   : > { %v885_v13 = vmul.f32 1.442695, %v866_v48  ;;  %v887_v15 = vmul.f32 1.442695, %v867_v1  ;;  %v889_v19 = vmul.f32 1.442695, %v868_v2  ;;  %v872_v25 = vsub.f32 %v1974_v26, %v2040_v44 }
 0x277   : > { %1405 = vpow2.f32 %v879_v4  ;;  %v891_v23 = vmul.f32 1.442695, %v869_v11  ;;  %v893_v27 = vmul.f32 1.442695, %v870_v17  ;;  %v873_v29 = vsub.f32 %v1968_v20, %v2040_v44 }
 0x278   : > { %1407 = vpow2.f32 %v881_v6  ;;  %v895_v31 = vmul.f32 1.442695, %v871_v21  ;;  %v874_v7 = vsub.f32 %v1972_v24, %v2040_v44  ;;  %v897_v35 = vmul.f32 1.442695, %v872_v25 }
 0x279   : > { %1409 = vpow2.f32 %v883_v9  ;;  %v875_v38 = vsub.f32 %v1978_v30, %v2040_v44  ;;  %v899_v39 = vmul.f32 1.442695, %v873_v29  ;;  %v876_v45 = vsub.f32 %v1982_v34, %v2040_v44 }
 0x27a   : > { %1411 = vpow2.f32 %v885_v13  ;;  %v901_v48 = vmul.f32 1.442695, %v874_v7  ;;  %v877_v9 = vsub.f32 %v1976_v28, %v2040_v44  ;;  %v878_v51 = vsub.f32 %v1980_v32, %v2040_v44 }
 0x27b   : > { %1413 = vpow2.f32 %v887_v15  ;;  %v903_v11 = vmul.f32 1.442695, %v875_v38  ;;  %v905_v17 = vmul.f32 1.442695, %v876_v45  ;;  %v929_v59 = vmul.f32 1.442695, %v928_v57 }
 0x27c   : > { %1415 = vpow2.f32 %v889_v19  ;;  %v909_v53 = vmul.f32 1.442695, %v878_v51 }
 0x27d   : > { %1417 = vpow2.f32 %v891_v23  ;;  %v907_v23 = vmul.f32 1.442695, %v877_v9 }
 0x27e   : > { %1419 = vpow2.f32 %v893_v27 }
 0x27f   : > { %1421 = vpow2.f32 %v895_v31 }
 0x280   : > { %1423 = vpow2.f32 %v897_v35 }
 0x281   : > { %v1406_v36 = vpop.eup %1405  ;;  %1425 = vpow2.f32 %v899_v39 }
 0x282   : > { %v1408_v37 = vpop.eup %1407  ;;  %v911_v41 = vsel %vm767_vm1, %v1406_v36, 0.0  ;;  %1427 = vpow2.f32 %v901_v48 }
 0x283   : > { %v1410_v42 = vpop.eup %1409  ;;  %v912_v46 = vsel %vm768_vm2, %v1408_v37, 0.0  ;;  %1429 = vpow2.f32 %v903_v11 }
 0x284   : > { %v1412_v47 = vpop.eup %1411  ;;  %v913_v1 = vsel %vm769_vm3, %v1410_v42, 0.0  ;;  %v932_v2 = vadd.f32 %v912_v46, %v911_v41  ;;  %1431 = vpow2.f32 %v905_v17 }
 0x285   : > { %v1414_v4 = vpop.eup %1413  ;;  %v914_v6 = vsel %vm770_vm4, %v1412_v47, 0.0  ;;  %1433 = vpow2.f32 %v907_v23 }
 0x286   : > { %v1416_v49 = vpop.eup %1415  ;;  %v933_v13 = vadd.f32 %v932_v2, %v913_v1  ;;  %v915_v50 = vsel %vm771_vm5, %v1414_v4, 0.0  ;;  %1435 = vpow2.f32 %v909_v53 }
 0x287   : > { %v1418_v15 = vpop.eup %1417  ;;  %v916_v52 = vsel %vm772_vm6, %v1416_v49, 0.0  ;;  %1437 = vpow2.f32 %v929_v59 }
 0x288   : > { %v934_v19 = vadd.f32 %v933_v13, %v914_v6  ;;  %v1420_v21 = vpop.eup %1419  ;;  %v917_v27 = vsel %vm773_vm7, %v1418_v15, 0.0  ;;  %v927_v15 = vld [vmem:[#allocation3] sm:$0x1] }
 0x289   : > { %v1422_v29 = vpop.eup %1421  ;;  %v918_v44 = vsel %vm774_vm8, %v1420_v21, 0.0 }
 0x28a   : > { %v935_v25 = vadd.f32 %v934_v19, %v915_v50  ;;  %v1424_v7 = vpop.eup %1423  ;;  %v919_v54 = vsel %vm775_vm9, %v1422_v29, 0.0 }
 0x28b   : > { %v1426_v36 = vpop.eup %1425  ;;  %v920_v55 = vsel %vm776_vm10, %v1424_v7, 0.0 }
 0x28c   : > { %v936_v31 = vadd.f32 %v935_v25, %v916_v52  ;;  %v1428_v38 = vpop.eup %1427  ;;  %v921_v41 = vsel %vm777_vm11, %v1426_v36, 0.0 }
 0x28d   : > { %v1430_v42 = vpop.eup %1429  ;;  %v922_v45 = vsel %vm778_vm12, %v1428_v38, 0.0 }
 0x28e   : > { %v937_v35 = vadd.f32 %v936_v31, %v917_v27  ;;  %v1432_v46 = vpop.eup %1431  ;;  %v923_v48 = vsel %vm779_vm13, %v1430_v42, 0.0 }
 0x28f   : > { %v1434_v58 = vpop.eup %1433  ;;  %v924_v2 = vsel %vm780_vm14, %v1432_v46, 0.0 }
 0x290   : > { %v938_v37 = vadd.f32 %v937_v35, %v918_v44  ;;  %v1436_v4 = vpop.eup %1435  ;;  %v925_v60 = vsel %vm781_vm15, %v1434_v58, 0.0 }
 0x291   : > { %v926_v40 = vsel %vm782_vm0, %v1436_v4, 0.0  ;;  %v1438_v50 = vpop.eup %1437 }
 0x292   : > { %v939_v39 = vadd.f32 %v938_v37, %v919_v54  ;;  %v931_v51 = vmul.f32 %v1438_v50, %v927_v15 }
 0x294   : > { %v940_v56 = vadd.f32 %v939_v39, %v920_v55 }
 0x296   : > { %v941_v47 = vadd.f32 %v940_v56, %v921_v41 }
 0x298   : > { %v942_v1 = vadd.f32 %v941_v47, %v922_v45 }
 0x29a   : > { %v943_v6 = vadd.f32 %v942_v1, %v923_v48 }
 0x29c   : > { %v944_v49 = vadd.f32 %v943_v6, %v924_v2 }
 0x29e   : > { %v945_v43 = vadd.f32 %v944_v49, %v925_v60 }
 0x2a0   : > { %v946_v9 = vadd.f32 %v945_v43, %v926_v40 }
 0x2a2   : > { %v947_v61 = vrot.slane %v946_v9, 4 }
 0x2a4   : > { %v948_v11 = vadd.f32 %v947_v61, %v946_v9 }
 0x2a6   : > { %v949_v13 = vrot.slane %v948_v11, 2 }
 0x2a8   : > { %v950_v62 = vadd.f32 %v949_v13, %v948_v11 }
 0x2aa   : > { %v951_v17 = vrot.slane %v950_v62, 1 }
 0x2ac   : > { %v952_v19 = vadd.f32 %v951_v17, %v950_v62 }
 0x2ae   : > { %v953_v52 = vadd.f32 %v952_v19, %v931_v51 }
 0x2b0   : > { %954 = vst [vmem:[#allocation3] sm:$0x1] %v953_v52 }
 0x2b1 PF: > { %p1144_p10 = scmp.ne.s32.totalorder %s1557_s22, 1 }
 0x2b2   : > { %v960_v21 = vld [vmem:[#allocation2] sm:$0x1] (!%p1144_p10)  ;;  %v968_v25 = vsub.s32 (!%p1144_p10), 0, %v1882_v33 }
 0x2b3   : > { %959 = sbr.rel (%p1144_p10) target bundleno = 723 (0x2d3), region = 56 }
 0x2b7   : > { %v961_v63 = vld [vmem:[#allocation3] sm:$0x1] (!%p1144_p10) }
 0x2b8   : > { %1439 = vlog2.f32 (!%p1144_p10), %v961_v63 }
 0x2c2   : > { %v1440_v0 = vpop.eup %1439 }
 0x2c3   : > { %v963_v23 = vmul.f32 0.6931472, %v1440_v0 }
 0x2c5   : > { %v964_v27 = vadd.f32 %v963_v23, %v960_v21 }
 0x2c7   : > { %v969_v29 = vrot.slane %v964_v27, %v968_v25 }
 0x2c9   : > { %v971_v53 = vsub.f32 %v1954_v5, %v969_v29  ;;  %v972_v31 = vsub.f32 %v1958_v10, %v969_v29  ;;  %v973_v44 = vsub.f32 %v1952_v3, %v969_v29  ;;  %v974_v7 = vsub.f32 %v1956_v8, %v969_v29 }
 0x2ca   : > { %v975_v35 = vsub.f32 %v1962_v14, %v969_v29  ;;  %v976_v54 = vsub.f32 %v1966_v18, %v969_v29  ;;  %v977_v33 = vsub.f32 %v1960_v12, %v969_v29  ;;  %v978_v36 = vsub.f32 %v1964_v16, %v969_v29 }
 0x2cb   : > { %987 = vst [vmem:[%s1753_s27] sm:$0xff] %v971_v53  ;;  %988 = vst [vmem:[%s1753_s27 + $0x8] sm:$0xff] %v972_v31  ;;  %v979_v3 = vsub.f32 %v1970_v22, %v969_v29  ;;  %v980_v5 = vsub.f32 %v1974_v26, %v969_v29  ;;  %v981_v8 = vsub.f32 %v1968_v20, %v969_v29 }
 0x2cc   : > { %989 = vst [vmem:[%s1753_s27 + $0x10] sm:$0xff] %v973_v44  ;;  %990 = vst [vmem:[%s1753_s27 + $0x18] sm:$0xff] %v974_v7  ;;  %v982_v10 = vsub.f32 %v1972_v24, %v969_v29  ;;  %v983_v12 = vsub.f32 %v1978_v30, %v969_v29  ;;  %v984_v14 = vsub.f32 %v1982_v34, %v969_v29 }
 0x2cd   : > { %991 = vst [vmem:[%s1753_s27 + $0x20] sm:$0xff] %v975_v35  ;;  %992 = vst [vmem:[%s1753_s27 + $0x28] sm:$0xff] %v976_v54  ;;  %v985_v16 = vsub.f32 %v1976_v28, %v969_v29  ;;  %v986_v18 = vsub.f32 %v1980_v32, %v969_v29 }
 0x2ce   : > { %993 = vst [vmem:[%s1753_s27 + $0x30] sm:$0xff] %v977_v33  ;;  %994 = vst [vmem:[%s1753_s27 + $0x38] sm:$0xff] %v978_v36 }
 0x2cf   : > { %995 = vst [vmem:[%s1753_s27 + $0x40] sm:$0xff] %v979_v3  ;;  %996 = vst [vmem:[%s1753_s27 + $0x48] sm:$0xff] %v980_v5 }
 0x2d0   : > { %997 = vst [vmem:[%s1753_s27 + $0x50] sm:$0xff] %v981_v8  ;;  %998 = vst [vmem:[%s1753_s27 + $0x58] sm:$0xff] %v982_v10 }
 0x2d1   : > { %999 = vst [vmem:[%s1753_s27 + $0x60] sm:$0xff] %v983_v12  ;;  %1000 = vst [vmem:[%s1753_s27 + $0x68] sm:$0xff] %v984_v14 }
 0x2d2   : > { %1001 = vst [vmem:[%s1753_s27 + $0x70] sm:$0xff] %v985_v16  ;;  %1002 = vst [vmem:[%s1753_s27 + $0x78] sm:$0xff] %v986_v18 }
 0x2d3 PF: > { %s1152_s22 = sshll.u32 %s1553_s21, 11  ;;  %s1017_s15 = sshll.u32 %s1753_s27, 4  ;;  %s2150_s15 = int_to_ptr.vmem [resolvable:$true] %s1017_s15 }
 0x2d4   : > { %s2147_s6 = scalar_lea.hbm %s2209_s5, %s1152_s22  ;;  %s1004_s9 = scalar_lea.sflag [#allocation6], %s1740_s26 }
 0x2d5   : > { %s1471_s16 = scalar_lea.vmem %s2150_s15, 2048  ;;  %p2217_p2 = scmp.ne.s32.totalorder %s2213_s10, 0 }
 0x2d6   : > { %p1472_p12 = scmp.ne.s32.totalorder %s2150_s15, %s1471_s16  ;;  %s1576_s14 = smov [#allocation7]  }
 0x2d7   : > { %s1475_s7 = sshll.u32 %s1576_s14, 4  ;;  %s1476_s7 = int_to_ptr.vmem [resolvable:$false] %s1475_s7 }
 0x2d8   : > { %p1473_p5 = pnand %p1472_p12, %p2217_p2  ;;  %s1477_s21 = scalar_lea.vmem %s1476_s7, 4096 }
 0x2d9   : > { %p1478_p7 = scmp.lt.s32.totalorder %s2150_s15, %s1476_s7  ;;  %p1479_p9 = scmp.lt.s32.totalorder %s1477_s21, %s1471_s16 }
 0x2da   : > { %p1474_p3 = pneg %p1473_p5 }
 0x2db   : > { %p1480_p1 = por %p1479_p9, %p1478_p7 }
 0x2dd   : > { %p1481_p4 = pnand %p1480_p1, %p1474_p3 }
 0x2df   : > { %1484 = shalt.err (!%p1481_p4)
}
 0x2e0   : > { %s1485_s27 = scalar_lea.hbm %s2147_s6, 2048  ;;  %s1489_s22 = scalar_lea.hbm %s2209_s5, 8192 }
 0x2e1   : > { %p1486_p6 = scmp.ne.s32.totalorder %s2147_s6, %s1485_s27  ;;  %p1490_p0 = scmp.lt.u32.totalorder %s2147_s6, %s2209_s5 }
 0x2e2   : > { %p1491_p8 = scmp.lt.u32.totalorder %s1489_s22, %s1485_s27  ;;  %p1493_p12 = scmp.lt.u32.totalorder %s1485_s27, %s2147_s6 }
 0x2e3   : > { %p1487_p11 = pnand %p1486_p6, %p2217_p2 }
 0x2e4   : > { %p1492_p10 = por %p1491_p8, %p1490_p0 }
 0x2e5   : > { %p1488_p13 = pneg %p1487_p11 }
 0x2e6   : > { %p1494_p5 = por %p1493_p12, %p1492_p10 }
 0x2e8   : > { %p1495_p3 = pnand %p1494_p5, %p1488_p13 }
 0x2ea   : > { %1498 = shalt.err (!%p1495_p3)
}
 0x2eb   : > { %s1577_s16 = smov 128   ;;  %s1578_s14 = smov 8  }
 0x2ec   : > { %1271 = dma.vmem_to_hbm [thread:$0]  (%p2217_p2), %s2150_s15, 2048, %s2147_s6, %s1004_s9, %s1577_s16, %s1577_s16, %s1578_s14  }
 0x2ed PF: > { %p1282_p7 = scmp.ge.s32.totalorder %s1569_s25, 2  ;;  %s1032_s7 = sand.u32 1, %s1541_s18  }
 0x2ee   : > { %p2218_p9 = scmp.ne.s32.totalorder %s2214_s11, 0  ;;  %s1033_s21 = scalar_lea.sflag [#allocation6], %s1032_s7 }
 0x2f0   : > { %p1278_p1 = pnand %p1282_p7, %p2218_p9 }
 0x2f2   : > { %1536 = dma.done.wait (!%p1278_p1), %s1033_s21, 2048  }
 0x2f3   : > { %1538 = vsyncadd (!%p1278_p1), %s1033_s21, 4294965248  ;;  %s21_s25 = sadd.s32 1, %s1569_s25   ;;  %s2219_s18 = smov %s1545_s19 }
 0x2f4   : > { %p18_p4 = scmp.ge.s32.totalorder %s21_s25, 10   ;;  %s2220_s19 = smov %s1549_s20 }
 0x2f5   : > { %s2221_s20 = smov %s1674_s8  ;;  %s2222_s21 = smov %s1561_s23 }
 0x2f6   : > { %s2223_s22 = smov %s1565_s24  ;;  %s2224_s23 = smov %s2227_s28 }
 0x2f7   : > { %s2225_s24 = smov %s2231_s29  ;;  %20 = sbr.rel (!%p18_p4) target bundleno = 7 (0x7), region = 97 }
 0x2fe   :  { %1038 = vsyncpa [#allocation5], 1 }
 0x2ff   :  { %1040 = vsyncpa [#allocation5 + $0x1], 1 }
 0x300   :  { %1041 = vsyncpa [#allocation6], 1 }
 0x301   :  { %1043 = vsyncpa [#allocation6 + $0x1], 1 }

</bundles_post_ra>
